<compile_context>
chip_gen: v6e
topology: v6e:2x2x1
jax: 0.10.0
libtpu: 0.0.40
codegen_flags: <defaults>
</compile_context>

<pallas_src>
import functools

import jax
import jax.numpy as jnp
from jax.experimental import pallas as pl
from jax.experimental.pallas import tpu as pltpu

HIDDEN = 50
HIDDEN_PAD = 128   # hidden 50 -> 128 lanes (zero-padded, math bit-exact)
HEAD_PAD = 128     # fused head (A adv+value cols, 1 adv-sum col, rest zero) -> 128 lanes
PAD_FILL = -1e30   # written into output lanes >= action_dim (argmax/max-safe)


def _dueling_kernel(x_ref, w1_ref, w2_ref, wh_ref, b_ref, out_ref, *,
                    batch, action_dim):
    x = x_ref[...]                                                      # (B, S)

    # fc1 + relu  (padded hidden columns are exactly 0: zero weights + zero bias)
    h1 = jnp.dot(x, w1_ref[...], preferred_element_type=jnp.float32) + b_ref[0:1, :]
    h1 = jnp.maximum(h1, 0.0)                                           # (B, 128)

    # fc2 + relu
    h2 = jnp.dot(h1, w2_ref[...], preferred_element_type=jnp.float32) + b_ref[1:2, :]
    h2 = jnp.maximum(h2, 0.0)                                           # (B, 128)

    # fused dueling head (single MXU pass):
    #   cols [0, A) -> value + advantage_j     (head weights pre-summed at prep time)
    #   col  A      -> sum_j advantage_j       (per-row advantage sum)
    #   cols > A    -> exact zeros
    head = jnp.dot(h2, wh_ref[...], preferred_element_type=jnp.float32) + b_ref[2:3, :]

    # adv.mean() over all B*A advantage entries: one masked lane-reduce of column A.
    lane = jax.lax.broadcasted_iota(jnp.int32, head.shape, dimension=1)
    adv_sum = jnp.sum(jnp.where(lane == action_dim, head, 0.0))         # scalar
    adv_mean = adv_sum * (1.0 / (batch * action_dim))

    # lane-dense (B, 128) store; real result in cols [0, A), padding lanes set to a
    # large negative so the padded block can be consumed directly (e.g. by max/argmax).
    out_ref[...] = jnp.where(lane < action_dim, head - adv_mean, PAD_FILL)


def prepare_params(param_sets, action_dim):
    """One-time prep for N networks (e.g. [eval_net, target_net]).

    Pads hidden -> 128, fuses value+advantage into one matmul whose columns are
    already `value + adv_j`, adds an adv-sum column at lane `action_dim`, stacks the
    3 biases, and stacks everything on a leading network axis.
    """
    assert action_dim + 1 <= HEAD_PAD, "fused head needs action_dim + 1 <= 128"

    def prep_one(p):
        hidden = p["w1"].shape[1]
        w1 = jnp.zeros((p["w1"].shape[0], HIDDEN_PAD), jnp.float32).at[:, :hidden].set(p["w1"])
        b1 = jnp.zeros((HIDDEN_PAD,), jnp.float32).at[:hidden].set(p["b1"][0])
        w2 = jnp.zeros((HIDDEN_PAD, HIDDEN_PAD), jnp.float32).at[:hidden, :hidden].set(p["w2"])
        b2 = jnp.zeros((HIDDEN_PAD,), jnp.float32).at[:hidden].set(p["b2"][0])
        # fused head:
        #   col j < A : Wa[:, j] + Wv[:, 0]   -> head[:, j] = value + adv_j
        #   col A     : sum_j Wa[:, j]        -> head[:, A] = sum_j adv_j
        #   col > A   : 0
        wh = jnp.zeros((HIDDEN_PAD, HEAD_PAD), jnp.float32)
        wh = wh.at[:hidden, :action_dim].set(p["wa"] + p["wv"])          # (H,A)+(H,1) bcast
        wh = wh.at[:hidden, action_dim].set(jnp.sum(p["wa"], axis=1))
        bh = jnp.zeros((HEAD_PAD,), jnp.float32)
        bh = bh.at[:action_dim].set(p["ba"][0] + p["bv"][0, 0])
        bh = bh.at[action_dim].set(jnp.sum(p["ba"][0]))
        biases = jnp.stack([b1, b2, bh], axis=0)                         # (3, 128)
        return w1, w2, wh, biases

    prepped = [prep_one(p) for p in param_sets]
    return dict(
        w1=jnp.stack([t[0] for t in prepped], axis=0),      # (N, S, 128)
        w2=jnp.stack([t[1] for t in prepped], axis=0),      # (N, 128, 128)
        wh=jnp.stack([t[2] for t in prepped], axis=0),      # (N, 128, 128)
        biases=jnp.stack([t[3] for t in prepped], axis=0),  # (N, 3, 128)
    )


def dueling_dqn_forward(x, prepped, action_dim):
    """x: (n_nets, batch, state_dim) f32; prepped: output of prepare_params.

    Returns the padded (n_nets, batch, 128) Q block; cols [0, action_dim) are the real
    Q-values, cols >= action_dim are PAD_FILL (= -1e30), so max/argmax over the last
    dim is safe without any post-kernel slice.
    """
    n_nets, batch, state_dim = x.shape
    kernel = functools.partial(_dueling_kernel, batch=batch, action_dim=action_dim)

    grid_spec = pltpu.PrefetchScalarGridSpec(
        num_scalar_prefetch=0,
        grid=(n_nets,),   # "network" axis: eval + target in one launch / one weight DMA
        in_specs=[
            pl.BlockSpec((None, batch, state_dim), lambda n: (n, 0, 0)),
            pl.BlockSpec((None, state_dim, HIDDEN_PAD), lambda n: (n, 0, 0)),
            pl.BlockSpec((None, HIDDEN_PAD, HIDDEN_PAD), lambda n: (n, 0, 0)),
            pl.BlockSpec((None, HIDDEN_PAD, HEAD_PAD), lambda n: (n, 0, 0)),
            pl.BlockSpec((None, 3, HIDDEN_PAD), lambda n: (n, 0, 0)),
        ],
        out_specs=pl.BlockSpec((None, batch, HEAD_PAD), lambda n: (n, 0, 0)),
    )
    # TODO(synk): for large-batch replay scoring (B >= ~512) add a second, "parallel"
    # batch grid axis (multiple-of-256 blocks) and bf16 matmul inputs per the review.
    return pl.pallas_call(
        kernel,
        out_shape=jax.ShapeDtypeStruct((n_nets, batch, HEAD_PAD), jnp.float32),
        grid_spec=grid_spec,
        compiler_params=pltpu.CompilerParams(dimension_semantics=("parallel",)),
    )(x, prepped["w1"], prepped["w2"], prepped["wh"], prepped["biases"])


def init_params(key, state_dim, action_dim, hidden=HIDDEN):
    """Synthetic init; shapes match the nn.Linear layers (weights stored (in, out))."""
    ks = jax.random.split(key, 8)

    def lin(kw, kb, fan_in, fan_out):
        bound = 1.0 / jnp.sqrt(fan_in)
        w = jax.random.uniform(kw, (fan_in, fan_out), jnp.float32, -bound, bound)
        b = jax.random.uniform(kb, (1, fan_out), jnp.float32, -bound, bound)
        return w, b

    w1, b1 = lin(ks[0], ks[1], state_dim, hidden)
    w2, b2 = lin(ks[2], ks[3], hidden, hidden)
    wv, bv = lin(ks[4], ks[5], hidden, 1)
    wa, ba = lin(ks[6], ks[7], hidden, action_dim)
    return dict(w1=w1, b1=b1, w2=w2, b2=b2, wv=wv, bv=bv, wa=wa, ba=ba)


def reference_forward(x, p):
    h1 = jax.nn.relu(x @ p["w1"] + p["b1"])
    h2 = jax.nn.relu(h1 @ p["w2"] + p["b2"])
    val = h2 @ p["wv"] + p["bv"]
    adv = h2 @ p["wa"] + p["ba"]
    return val + adv - jnp.mean(adv)


if __name__ == "__main__":
    # Shapes consistent with the module: state = 4*8+6 = 38, action = 2*34 = 68,
    # batch = BatchSize = 64.  Two networks (eval + target) fused into one call,
    # exactly like the Learn() step's q_eval / q_next pair.
    batch, state_dim, action_dim = 64, 38, 68
    key = jax.random.PRNGKey(0)
    k_s, k_sn, k_e, k_t = jax.random.split(key, 4)

    b_s = jax.random.normal(k_s, (batch, state_dim), jnp.float32)       # states
    b_s_next = jax.random.normal(k_sn, (batch, state_dim), jnp.float32)  # next states

    eval_params = init_params(k_e, state_dim, action_dim)
    target_params = init_params(k_t, state_dim, action_dim)
    prepped = prepare_params([eval_params, target_params], action_dim)

    x = jnp.stack([b_s, b_s_next], axis=0)                              # (2, B, S)
    out = dueling_dqn_forward(x, prepped, action_dim)
    out = jax.block_until_ready(out)

    assert out.shape == (2, batch, HEAD_PAD)
    q_eval_ref = reference_forward(b_s, eval_params)
    q_next_ref = reference_forward(b_s_next, target_params)
    assert jnp.allclose(out[0, :, :action_dim], q_eval_ref, atol=1e-4, rtol=1e-4), \
        "eval-net mismatch vs reference"
    assert jnp.allclose(out[1, :, :action_dim], q_next_ref, atol=1e-4, rtol=1e-4), \
        "target-net mismatch vs reference"
    # padded lanes are large-negative, so max/argmax on the padded block is safe
    assert bool(jnp.all(out[:, :, action_dim:] <= -1e29))
    assert bool(jnp.all(jnp.argmax(out[0], axis=-1) == jnp.argmax(q_eval_ref, axis=-1)))

    print("KERNEL_OK")
</pallas_src>

<mosaic_0001>
module attributes {stable_mosaic.version = 11 : i64} {
  func.func @_dueling_kernel(%arg0: i32, %arg1: memref<1x64x38xf32, #tpu.memory_space<vmem>>, %arg2: memref<1x38x128xf32, #tpu.memory_space<vmem>>, %arg3: memref<1x128x128xf32, #tpu.memory_space<vmem>>, %arg4: memref<1x128x128xf32, #tpu.memory_space<vmem>>, %arg5: memref<1x3x128xf32, #tpu.memory_space<vmem>>, %arg6: memref<1x64x128xf32, #tpu.memory_space<vmem>>) attributes {dimension_semantics = [#tpu.dimension_semantics<parallel>], iteration_bounds = array<i64: 2>, scalar_prefetch = 0 : i64, scratch_operands = 0 : i64, tpu.core_type = #tpu.core_type<tc>, window_params = [{transform_indices = @transform_0, window_bounds = array<i64: 1, 64, 38>}, {transform_indices = @transform_1, window_bounds = array<i64: 1, 38, 128>}, {transform_indices = @transform_2, window_bounds = array<i64: 1, 128, 128>}, {transform_indices = @transform_3, window_bounds = array<i64: 1, 128, 128>}, {transform_indices = @transform_4, window_bounds = array<i64: 1, 3, 128>}, {transform_indices = @transform_5, window_bounds = array<i64: 1, 64, 128>}]} {
    %c0 = arith.constant 0 : index
    %c0_0 = arith.constant 0 : index
    %c0_1 = arith.constant 0 : index
    %0 = vector.load %arg1[%c0, %c0_0, %c0_1] : memref<1x64x38xf32, #tpu.memory_space<vmem>>, vector<1x64x38xf32>
    %1 = vector.shape_cast %0 : vector<1x64x38xf32> to vector<64x38xf32>
    %c0_2 = arith.constant 0 : index
    %c0_3 = arith.constant 0 : index
    %c0_4 = arith.constant 0 : index
    %2 = vector.load %arg2[%c0_2, %c0_3, %c0_4] : memref<1x38x128xf32, #tpu.memory_space<vmem>>, vector<1x38x128xf32>
    %3 = vector.shape_cast %2 : vector<1x38x128xf32> to vector<38x128xf32>
    %cst = arith.constant dense<0.000000e+00> : vector<64x128xf32>
    %4 = tpu.matmul %1, %3, %cst {dimension_numbers = #tpu.dot_dimension_numbers<[1], [0], [0], [1], [0, 0, 1, 1], [], []>} : vector<64x38xf32>, vector<38x128xf32>, vector<64x128xf32> -> vector<64x128xf32>
    %c0_5 = arith.constant 0 : index
    %c0_6 = arith.constant 0 : index
    %c0_7 = arith.constant 0 : index
    %5 = vector.load %arg5[%c0_5, %c0_6, %c0_7] : memref<1x3x128xf32, #tpu.memory_space<vmem>>, vector<1x1x128xf32>
    %6 = vector.shape_cast %5 : vector<1x1x128xf32> to vector<1x128xf32>
    %7 = vector.broadcast %6 : vector<1x128xf32> to vector<64x128xf32>
    %8 = arith.addf %4, %7 : vector<64x128xf32>
    %cst_8 = arith.constant 0.000000e+00 : f32
    %9 = vector.broadcast %cst_8 : f32 to vector<64x128xf32>
    %10 = arith.maximumf %8, %9 : vector<64x128xf32>
    %c0_9 = arith.constant 0 : index
    %c0_10 = arith.constant 0 : index
    %c0_11 = arith.constant 0 : index
    %11 = vector.load %arg3[%c0_9, %c0_10, %c0_11] : memref<1x128x128xf32, #tpu.memory_space<vmem>>, vector<1x128x128xf32>
    %12 = vector.shape_cast %11 : vector<1x128x128xf32> to vector<128x128xf32>
    %cst_12 = arith.constant dense<0.000000e+00> : vector<64x128xf32>
    %13 = tpu.matmul %10, %12, %cst_12 {dimension_numbers = #tpu.dot_dimension_numbers<[1], [0], [0], [1], [0, 0, 1, 1], [], []>} : vector<64x128xf32>, vector<128x128xf32>, vector<64x128xf32> -> vector<64x128xf32>
    %c0_13 = arith.constant 0 : index
    %c1 = arith.constant 1 : index
    %c0_14 = arith.constant 0 : index
    %14 = vector.load %arg5[%c0_13, %c1, %c0_14] : memref<1x3x128xf32, #tpu.memory_space<vmem>>, vector<1x1x128xf32>
    %15 = vector.shape_cast %14 : vector<1x1x128xf32> to vector<1x128xf32>
    %16 = vector.broadcast %15 : vector<1x128xf32> to vector<64x128xf32>
    %17 = arith.addf %13, %16 : vector<64x128xf32>
    %cst_15 = arith.constant 0.000000e+00 : f32
    %18 = vector.broadcast %cst_15 : f32 to vector<64x128xf32>
    %19 = arith.maximumf %17, %18 : vector<64x128xf32>
    %c0_16 = arith.constant 0 : index
    %c0_17 = arith.constant 0 : index
    %c0_18 = arith.constant 0 : index
    %20 = vector.load %arg4[%c0_16, %c0_17, %c0_18] : memref<1x128x128xf32, #tpu.memory_space<vmem>>, vector<1x128x128xf32>
    %21 = vector.shape_cast %20 : vector<1x128x128xf32> to vector<128x128xf32>
    %cst_19 = arith.constant dense<0.000000e+00> : vector<64x128xf32>
    %22 = tpu.matmul %19, %21, %cst_19 {dimension_numbers = #tpu.dot_dimension_numbers<[1], [0], [0], [1], [0, 0, 1, 1], [], []>} : vector<64x128xf32>, vector<128x128xf32>, vector<64x128xf32> -> vector<64x128xf32>
    %c0_20 = arith.constant 0 : index
    %c2 = arith.constant 2 : index
    %c0_21 = arith.constant 0 : index
    %23 = vector.load %arg5[%c0_20, %c2, %c0_21] : memref<1x3x128xf32, #tpu.memory_space<vmem>>, vector<1x1x128xf32>
    %24 = vector.shape_cast %23 : vector<1x1x128xf32> to vector<1x128xf32>
    %25 = vector.broadcast %24 : vector<1x128xf32> to vector<64x128xf32>
    %26 = arith.addf %22, %25 : vector<64x128xf32>
    %27 = tpu.iota {dimensions = array<i32: 1>} : vector<64x128xi32>
    %c68_i32 = arith.constant 68 : i32
    %28 = vector.broadcast %c68_i32 : i32 to vector<64x128xi32>
    %29 = arith.cmpi eq, %27, %28 : vector<64x128xi32>
    %cst_22 = arith.constant 0.000000e+00 : f32
    %30 = vector.broadcast %cst_22 : f32 to vector<64x128xf32>
    %31 = arith.select %29, %26, %30 : vector<64x128xi1>, vector<64x128xf32>
    %32 = vector.shape_cast %31 : vector<64x128xf32> to vector<1x64x128xf32>
    %cst_23 = arith.constant dense<0.000000e+00> : vector<1xf32>
    %33 = vector.multi_reduction <add>, %32, %cst_23 [1, 2] : vector<1x64x128xf32> to vector<1xf32>
    %34 = vector.shape_cast %33 : vector<1xf32> to vector<1x1x1xf32>
    %35 = vector.extract %34[0, 0, 0] : f32 from vector<1x1x1xf32>
    %cst_24 = arith.constant 2.29779413E-4 : f32
    %36 = arith.mulf %35, %cst_24 : f32
    %c68_i32_25 = arith.constant 68 : i32
    %37 = vector.broadcast %c68_i32_25 : i32 to vector<64x128xi32>
    %38 = arith.cmpi slt, %27, %37 : vector<64x128xi32>
    %39 = vector.broadcast %36 : f32 to vector<64x128xf32>
    %40 = arith.subf %26, %39 : vector<64x128xf32>
    %cst_26 = arith.constant -1.000000e+30 : f32
    %41 = vector.broadcast %cst_26 : f32 to vector<64x128xf32>
    %42 = arith.select %38, %40, %41 : vector<64x128xi1>, vector<64x128xf32>
    %c0_27 = arith.constant 0 : index
    %c0_28 = arith.constant 0 : index
    %c0_29 = arith.constant 0 : index
    %43 = vector.load %arg6[%c0_27, %c0_28, %c0_29] : memref<1x64x128xf32, #tpu.memory_space<vmem>>, vector<1x64x128xf32>
    %44 = vector.shape_cast %43 : vector<1x64x128xf32> to vector<64x128xf32>
    %45 = vector.shape_cast %42 : vector<64x128xf32> to vector<1x64x128xf32>
    tpu.vector_store %arg6[%c0_27, %c0_28, %c0_29], %45 {strides = array<i32>} : memref<1x64x128xf32, #tpu.memory_space<vmem>>, vector<1x64x128xf32>,
    return
  }
  func.func @transform_0(%arg0: i32) -> (i32, i32, i32) {
    %c0_i32 = arith.constant 0 : i32
    %c0_i32_0 = arith.constant 0 : i32
    %c0_i32_1 = arith.constant 0 : i32
    return %arg0, %c0_i32, %c0_i32_0 : i32, i32, i32
  }
  func.func @transform_1(%arg0: i32) -> (i32, i32, i32) {
    %c0_i32 = arith.constant 0 : i32
    %c0_i32_0 = arith.constant 0 : i32
    %c0_i32_1 = arith.constant 0 : i32
    return %arg0, %c0_i32, %c0_i32_0 : i32, i32, i32
  }
  func.func @transform_2(%arg0: i32) -> (i32, i32, i32) {
    %c0_i32 = arith.constant 0 : i32
    %c0_i32_0 = arith.constant 0 : i32
    %c0_i32_1 = arith.constant 0 : i32
    return %arg0, %c0_i32, %c0_i32_0 : i32, i32, i32
  }
  func.func @transform_3(%arg0: i32) -> (i32, i32, i32) {
    %c0_i32 = arith.constant 0 : i32
    %c0_i32_0 = arith.constant 0 : i32
    %c0_i32_1 = arith.constant 0 : i32
    return %arg0, %c0_i32, %c0_i32_0 : i32, i32, i32
  }
  func.func @transform_4(%arg0: i32) -> (i32, i32, i32) {
    %c0_i32 = arith.constant 0 : i32
    %c0_i32_0 = arith.constant 0 : i32
    %c0_i32_1 = arith.constant 0 : i32
    return %arg0, %c0_i32, %c0_i32_0 : i32, i32, i32
  }
  func.func @transform_5(%arg0: i32) -> (i32, i32, i32) {
    %c0_i32 = arith.constant 0 : i32
    %c0_i32_0 = arith.constant 0 : i32
    %c0_i32_1 = arith.constant 0 : i32
    return %arg0, %c0_i32, %c0_i32_0 : i32, i32, i32
  }
}

</mosaic_0001>

<bundles_post_ra>
// kernel: tpu_custom_call.1
= control target key start
LH: loop header
LB: loop body
LE: loop exit
PB: predicated region body
PF: predicated region fallthrough
CT: control target
= control target key end

     0   :  { %10 = vsyncpa [#allocation3], 0  ;;  %s1589_s0 = inlined_call_operand.vmem [shape: f32[2,64,38], index: 0, kind: input, shape index: {}]   ;;  %s1590_s1 = inlined_call_operand.vmem [shape: f32[2,38,128], index: 1, kind: input, shape index: {}]   ;;  %s1591_s2 = inlined_call_operand.vmem [shape: f32[2,128,128], index: 2, kind: input, shape index: {}]   ;;  %s1592_s3 = inlined_call_operand.hbm [shape: f32[2,128,128], index: 3, kind: input, shape index: {}]   ;;  %s1593_s4 = inlined_call_operand.vmem [shape: f32[2,3,128], index: 4, kind: input, shape index: {}]   ;;  %s1594_s5 = inlined_call_operand.hbm [shape: f32[2,64,128], index: 5, kind: output, shape index: {}]  }
   0x1   :  { %12 = vsyncpa [#allocation3 + $0x1], 0 }
   0x2   :  { %13 = vsyncpa [#allocation4], 0 }
   0x3   :  { %15 = vsyncpa [#allocation4 + $0x1], 0  ;;  %s1319_s18 = smov 0   ;;  %s1321_s19 = smov 0  }
   0x4   :  { %s1323_s20 = smov 0   ;;  %s1325_s21 = smov 0  }
   0x5 LB: > { %s1340_s22 = sadd.s32 4294967295, %s1281_s21   ;;  %s929_s23 = sadd.s32 4294967294, %s1281_s21   ;;  %s1281_s21 = sphi %s1325_s21, %s1609_s21   ;;  %s1277_s20 = sphi %s1323_s20, %s1608_s20   ;;  %s1273_s19 = sphi %s1321_s19, %s1607_s19   ;;  %s1269_s18 = sphi %s1319_s18, %s1606_s18  }
   0x6   : > { %s1344_s24 = sadd.s32 1, %s1281_s21   ;;  %s106_s25 = sadd.s32 1, %s1277_s20 }
   0x7   : > { %s103_s26 = ssub.s32 %s1281_s21, %s1344_s24  ;;  %p113_p0 = scmp.ne.s32.totalorder %s1277_s20, %s1273_s19 }
   0x8   : > { %p104_p1 = scmp.eq.s32.totalorder %s103_s26, 0  ;;  %p114_p2 = scmp.eq.s32.totalorder %s1281_s21, 0 }
   0x9   : > { %p119_p3 = scmp.ne.s32.totalorder %s1273_s19, %s1269_s18  ;;  %p120_p4 = scmp.eq.s32.totalorder %s1340_s22, 0 }
   0xa   : > { %s1356_s27 = scalar_select %p104_p1, %s1277_s20, %s106_s25  }
   0xb   : > { %p1358_p5 = por %p114_p2, %p113_p0  ;;  %p1362_p6 = por %p120_p4, %p119_p3 }
   0xc   : > { %p169_p7 = scmp.eq.s32.totalorder %s1340_s22, 1  ;;  %p175_p8 = scmp.eq.s32.totalorder %s929_s23, 1 }
   0xd   : > { %s1598_s29 = scalar_select %p1362_p6, 1, 0 }
   0xe   : > { %p1151_p10 = scmp.lt.s32.totalorder %s1281_s21, 2  ;;  %p1369_p11 = por %p169_p7, %p113_p0 }
   0xf   : > { %p1373_p12 = por %p175_p8, %p119_p3  ;;  %s219_s7 = sand.u32 1, %s1277_s20  }
  0x10   : > { %s1599_s30 = scalar_select %p1369_p11, 1, 0 }
  0x11   : > { %s1600_s6 = scalar_select %p1373_p12, 1, 0 }
  0x12   : > { %s961_s8 = sshll.u32 %s1281_s21, 11  ;;  %s932_s9 = sshll.u32 %s219_s7, 7 }
  0x13   : > { %s1382_s12 = scalar_lea.hbm %s1592_s3, %s961_s8  ;;  %s223_s13 = scalar_lea.vmem [#allocation2], %s932_s9 }
  0x14   : > { %s230_s14 = sshll.u32 %s223_s13, 4  ;;  %p1386_p13 = pnand %p1151_p10, %p1358_p5  ;;  %s1390_s14 = int_to_ptr.vmem [resolvable:$true] %s230_s14 }
  0x15   : > { %s1392_s16 = scalar_lea.sflag [#allocation3], %s219_s7  ;;  %s1189_s17 = scalar_lea.hbm %s1382_s12, 2048 }
  0x16   : > { %p1190_p0 = scmp.ne.s32.totalorder %s1382_s12, %s1189_s17  ;;  %p1191_p1 = pneg %p1386_p13 }
  0x17   : > { %s1194_s26 = scalar_lea.hbm %s1592_s3, 4096  ;;  %p1195_p4 = scmp.lt.s32.totalorder %s1382_s12, %s1592_s3 }
  0x18   : > { %p1192_p2 = pnand %p1191_p1, %p1190_p0  ;;  %p1196_p5 = scmp.lt.s32.totalorder %s1194_s26, %s1189_s17 }
  0x1a   : > { %p1193_p3 = pneg %p1192_p2  ;;  %p1197_p7 = por %p1196_p5, %p1195_p4 }
  0x1c   : > { %p1198_p8 = pnand %p1197_p7, %p1193_p3 }
  0x1e   : > { %1201 = shalt.err (!%p1198_p8)
}
  0x1f   : > { %s1202_s7 = scalar_lea.vmem %s1390_s14, 2048  ;;  %s1283_s9 = smov [#allocation2]  }
  0x20   : > { %p1203_p10 = scmp.ne.s32.totalorder %s1390_s14, %s1202_s7  ;;  %s1207_s10 = sshll.u32 %s1283_s9, 4  ;;  %s1208_s10 = int_to_ptr.vmem [resolvable:$false] %s1207_s10 }
  0x21   : > { %s1209_s11 = scalar_lea.vmem %s1208_s10, 4096  ;;  %p1210_p2 = scmp.lt.s32.totalorder %s1390_s14, %s1208_s10 }
  0x22   : > { %p1205_p9 = pnand %p1203_p10, %p1191_p1  ;;  %p1211_p12 = scmp.lt.s32.totalorder %s1209_s11, %s1202_s7 }
  0x24   : > { %p1206_p0 = pneg %p1205_p9  ;;  %p1212_p11 = por %p1211_p12, %p1210_p2 }
  0x26   : > { %p1213_p6 = pnand %p1212_p11, %p1206_p0 }
  0x28   : > { %1216 = shalt.err (!%p1213_p6)
}
  0x29   : > { %s1284_s13 = smov 128   ;;  %s1285_s17 = smov 8  }
  0x2a   : > { %1146 = dma.hbm_to_vmem [thread:$0]  (!%p1386_p13), %s1382_s12, 2048, %s1390_s14, %s1392_s16, %s1284_s13, %s1284_s13, %s1285_s17  }
  0x2b   : > { %p935_p9 = scmp.ge.s32.totalorder %s1281_s21, 1  ;;  %p245_p1 = scmp.lt.s32.totalorder %s1281_s21, 3 }
  0x2d   : > { %p246_p3 = pnand %p935_p9, %p245_p1 }
  0x2e   : > { %s1416_s23 = sand.u32 (!%p246_p3), 1, %s1273_s19   ;;  %p1602_p6 = scmp.ne.s32.totalorder (!%p246_p3), %s1598_s29, 0 }
  0x2f   : > { %249 = sbr.rel (%p246_p3) target bundleno = 909 (0x38d), region = 40  ;;  %s936_s25 = sshll.u32 (!%p246_p3), %s1416_s23, 7 }
  0x30   : > { %s252_s26 = scalar_lea.sflag (!%p246_p3), [#allocation3], %s1416_s23  ;;  %s1420_s28 = scalar_lea.vmem (!%p246_p3), [#allocation2], %s936_s25 }
  0x34   : > { %1260 = dma.done.wait (%p1602_p6), %s252_s26, 2048  }
  0x35   : > { %1262 = vsyncadd (%p1602_p6), %s252_s26, 4294965248  ;;  %p301_p11 = scmp.lt.s32.totalorder %s1340_s22, 1  ;;  %vm363_vm0 = vcmask 1045504   ;;  %vm338_vm1 = vcmask 310272   ;;  %v629_v29 = vld [vmem:[%s1420_s28 + $0x78] sm:$0xff]  ;;  %v628_v30 = vld [vmem:[%s1420_s28 + $0x70] sm:$0xff] }
  0x36   : > { %v627_v31 = vld [vmem:[%s1420_s28 + $0x68] sm:$0xff]  ;;  %v626_v32 = vld [vmem:[%s1420_s28 + $0x60] sm:$0xff]  ;;  %v625_v33 = vld [vmem:[%s1420_s28 + $0x58] sm:$0xff]  ;;  %s964_s7 = sshll.u32 %s1340_s22, 10  ;;  %s795_s13 = scalar_lea.sflag [#allocation4], %s1416_s23 }
  0x37   : > { %s1428_s12 = scalar_select %p301_p11, %s1340_s22, 1  ;;  %v624_v34 = vld [vmem:[%s1420_s28 + $0x50] sm:$0xff]  ;;  %v623_v35 = vld [vmem:[%s1420_s28 + $0x48] sm:$0xff]  ;;  %v622_v36 = vld [vmem:[%s1420_s28 + $0x40] sm:$0xff] }
  0x38   : > { %v621_v37 = vld [vmem:[%s1420_s28 + $0x38] sm:$0xff]  ;;  %v620_v38 = vld [vmem:[%s1420_s28 + $0x30] sm:$0xff]  ;;  %v619_v39 = vld [vmem:[%s1420_s28 + $0x28] sm:$0xff]  ;;  %p1603_p13 = scmp.ne.s32.totalorder %s1599_s30, 0 }
  0x39   : > { %s1136_s14 = smul.u32 40, %s1428_s12  ;;  %s963_s15 = sshll.u32 %s1428_s12, 7  ;;  %v618_v40 = vld [vmem:[%s1420_s28 + $0x20] sm:$0xff] }
  0x3a   : > { %s962_s16 = sshll.u32 %s1428_s12, 6  ;;  %s1444_s25 = scalar_lea.vmem %s1591_s2, %s963_s15 }
  0x3b   : > { %s310_s9 = scalar_lea.vmem %s1590_s1, %s1136_s14  ;;  %s1439_s29 = scalar_lea.vmem %s1589_s0, %s962_s16  ;;  %v495_v5 = vld [vmem:[%s1444_s25 + $0x78] sm:$0xff]  ;;  %v494_v6 = vld [vmem:[%s1444_s25 + $0x70] sm:$0xff]  ;;  %v493_v8 = vld [vmem:[%s1444_s25 + $0x68] sm:$0xff] }
  0x3c   : > { %v332_v0 = vld [vmem:[%s310_s9 + $0x20] sm:$0x3f]  ;;  %v331_v1 = vld [vmem:[%s310_s9 + $0x18] sm:$0xff]  ;;  %v330_v3 = vld [vmem:[%s310_s9 + $0x10] sm:$0xff]  ;;  %1048 = vmatprep.subr.mxu1 %v495_v5  ;;  %s943_s26 = sshll.u32 %s1428_s12, 2 }
  0x3d   : > { %1026 = vmatprep.subr.msk.mxu0 %vm363_vm0, %v332_v0  ;;  %v320_v2 = vld [vmem:[%s1439_s29] sm:$0xff]  ;;  %v329_v4 = vld [vmem:[%s310_s9 + $0x8] sm:$0xff]  ;;  %1049 = vmatpush3.msra.mxu1 %v495_v5  ;;  %v322_v11 = vld [vmem:[%s1439_s29 + $0x10] sm:$0xff]  ;;  %s1494_s16 = scalar_lea.vmem %s1593_s4, %s943_s26 }
  0x3e   : > { %1027 = vmatpush3.msk.msra.mxu0 %vm363_vm0, %v332_v0  ;;  %1036 = vmatprep.mubr.msk.f32.mxu0 %vm338_vm1, %v320_v2  ;;  %v328_v7 = vld [vmem:[%s310_s9] sm:$0xff]  ;;  %v321_v9 = vld [vmem:[%s1439_s29 + $0x8] sm:$0xff]  ;;  %v491_v12 = vld [vmem:[%s1444_s25 + $0x58] sm:$0xff] }
  0x3f   : > { %1028 = vmatprep.subr.mxu0 %v331_v1  ;;  %1050 = vmatprep.subr.mxu1 %v494_v6  ;;  %v492_v10 = vld [vmem:[%s1444_s25 + $0x60] sm:$0xff]  ;;  %v323_v13 = vld [vmem:[%s1439_s29 + $0x18] sm:$0xff]  ;;  %v490_v14 = vld [vmem:[%s1444_s25 + $0x50] sm:$0xff] }
  0x40   : > { %1029 = vmatpush3.msra.mxu0 %v331_v1  ;;  %1051 = vmatpush3.msra.mxu1 %v494_v6  ;;  %v324_v15 = vld [vmem:[%s1439_s29 + $0x20] sm:$0xff]  ;;  %v489_v16 = vld [vmem:[%s1444_s25 + $0x48] sm:$0xff]  ;;  %v326_v19 = vld [vmem:[%s1439_s29 + $0x30] sm:$0xff] }
  0x41   : > { %1030 = vmatprep.subr.mxu0 %v330_v3  ;;  %1052 = vmatprep.subr.mxu1 %v493_v8  ;;  %v325_v17 = vld [vmem:[%s1439_s29 + $0x28] sm:$0xff]  ;;  %v488_v18 = vld [vmem:[%s1444_s25 + $0x40] sm:$0xff]  ;;  %v487_v20 = vld [vmem:[%s1444_s25 + $0x38] sm:$0xff] }
  0x42   : > { %1031 = vmatpush3.msra.mxu0 %v330_v3  ;;  %1053 = vmatpush3.msra.mxu1 %v493_v8  ;;  %v327_v21 = vld [vmem:[%s1439_s29 + $0x38] sm:$0xff]  ;;  %v486_v22 = vld [vmem:[%s1444_s25 + $0x30] sm:$0xff]  ;;  %v485_v23 = vld [vmem:[%s1444_s25 + $0x28] sm:$0xff]  ;;  %s1540_s29 = scalar_lea.hbm %s1594_s5, %s964_s7 }
  0x43   : > { %1032 = vmatprep.subr.mxu0 %v329_v4  ;;  %1054 = vmatprep.subr.mxu1 %v492_v10  ;;  %v484_v24 = vld [vmem:[%s1444_s25 + $0x20] sm:$0xff]  ;;  %v483_v25 = vld [vmem:[%s1444_s25 + $0x18] sm:$0xff]  ;;  %v482_v26 = vld [vmem:[%s1444_s25 + $0x10] sm:$0xff] }
  0x44   : > { %1033 = vmatpush3.msra.mxu0 %v329_v4  ;;  %1055 = vmatpush3.msra.mxu1 %v492_v10  ;;  %v481_v27 = vld [vmem:[%s1444_s25 + $0x8] sm:$0xff]  ;;  %v480_v28 = vld [vmem:[%s1444_s25] sm:$0xff]  ;;  %v617_v2 = vld [vmem:[%s1420_s28 + $0x18] sm:$0xff]  ;;  %s1286_s25 = smov [#allocation5]  }
  0x45   : > { %1034 = vmatprep.subr.mxu0 %v328_v7  ;;  %1056 = vmatprep.subr.mxu1 %v491_v12  ;;  %v944_v41 = vld [vmem:[%s1494_s16] ss:$0 sm:$0xff]  ;;  %v616_v3 = vld [vmem:[%s1420_s28 + $0x10] sm:$0xff]  ;;  %v615_v4 = vld [vmem:[%s1420_s28 + $0x8] sm:$0xff]  ;;  %s1221_s26 = sshll.u32 %s1286_s25, 4  ;;  %s1222_s26 = int_to_ptr.vmem [resolvable:$false] %s1221_s26 }
  0x46   : > { %1035 = vmatpush3.msra.mxu0 %v328_v7  ;;  %1057 = vmatpush3.msra.mxu1 %v491_v12  ;;  %v614_v5 = vld [vmem:[%s1420_s28] sm:$0xff]  ;;  %s937_s28 = sshll.u32 %s1416_s23, 6  ;;  %s1223_s14 = scalar_lea.vmem %s1222_s26, 2048 }
  0x47   : > { %1037 = vmatmul.mubr.msk.f32.vlgmr.msra.gmra.mxu0 %vm338_vm1, %v321_v9  ;;  %1058 = vmatprep.subr.mxu1 %v490_v14  ;;  %v954_v6 = vld [vmem:[%s1494_s16 + $0x1] ss:$0 sm:$0xff]  ;;  %s300_s9 = scalar_lea.vmem [#allocation5], %s937_s28 }
  0x48   : > { %1039 = vmatprep.mubr.msk.f32.mxu0 %vm338_vm1, %v322_v11  ;;  %1059 = vmatpush3.msra.mxu1 %v490_v14  ;;  %s808_s10 = sshll.u32 %s300_s9, 4  ;;  %s1542_s10 = int_to_ptr.vmem [resolvable:$true] %s808_s10 }
  0x49   : > { %1060 = vmatprep.subr.mxu1 %v489_v16  ;;  %1092 = vmatprep.subr.mxu0 %v629_v29  ;;  %s1217_s17 = scalar_lea.vmem %s1542_s10, 1024  ;;  %p1224_p7 = scmp.lt.s32.totalorder %s1542_s10, %s1222_s26 }
  0x4a   : > { %1061 = vmatpush3.msra.mxu1 %v489_v16  ;;  %1093 = vmatpush3.msra.mxu0 %v629_v29  ;;  %p1218_p12 = scmp.ne.s32.totalorder %s1542_s10, %s1217_s17  ;;  %p1225_p8 = scmp.lt.s32.totalorder %s1223_s14, %s1217_s17 }
  0x4b   : > { %1040 = vmatmul.mubr.msk.f32.gmra.mxu0 %vm338_vm1, %v323_v13  ;;  %1062 = vmatprep.subr.mxu1 %v488_v18 }
  0x4c   : > { %1042 = vmatprep.mubr.msk.f32.mxu0 %vm338_vm1, %v324_v15  ;;  %1063 = vmatpush3.msra.mxu1 %v488_v18  ;;  %p1219_p4 = pnand %p1218_p12, %p1603_p13  ;;  %p1226_p10 = por %p1225_p8, %p1224_p7 }
  0x4d   : > { %1064 = vmatprep.subr.mxu1 %v487_v20  ;;  %1094 = vmatprep.subr.mxu0 %v628_v30 }
  0x4e   : > { %1065 = vmatpush3.msra.mxu1 %v487_v20  ;;  %1095 = vmatpush3.msra.mxu0 %v628_v30  ;;  %p1220_p5 = pneg %p1219_p4 }
  0x4f   : > { %1043 = vmatmul.mubr.msk.f32.gmra.mxu0 %vm338_vm1, %v325_v17  ;;  %1066 = vmatprep.subr.mxu1 %v486_v22 }
  0x50   : > { %1045 = vmatprep.mubr.msk.f32.mxu0 %vm338_vm1, %v326_v19  ;;  %1067 = vmatpush3.msra.mxu1 %v486_v22  ;;  %p1227_p0 = pnand %p1226_p10, %p1220_p5 }
  0x51   : > { %1068 = vmatprep.subr.mxu1 %v485_v23  ;;  %1096 = vmatprep.subr.mxu0 %v627_v31 }
  0x52   : > { %1069 = vmatpush3.msra.mxu1 %v485_v23  ;;  %1097 = vmatpush3.msra.mxu0 %v627_v31  ;;  %v740_v31 = vlaneseq }
  0x53   : > { %1046 = vmatmul.mubr.msk.f32.gmra.mxu0 %vm338_vm1, %v327_v21  ;;  %1070 = vmatprep.subr.mxu1 %v484_v24 }
  0x54   : > { %1071 = vmatpush3.msra.mxu1 %v484_v24  ;;  %1098 = vmatprep.subr.mxu0 %v626_v32 }
  0x55   : > { %1072 = vmatprep.subr.mxu1 %v483_v25  ;;  %1099 = vmatpush3.msra.mxu0 %v626_v32 }
  0x56   : > { %1073 = vmatpush3.msra.mxu1 %v483_v25  ;;  %1100 = vmatprep.subr.mxu0 %v625_v33 }
  0x57   : > { %1074 = vmatprep.subr.mxu1 %v482_v26  ;;  %1101 = vmatpush3.msra.mxu0 %v625_v33  ;;  %v955_v33 = vld [vmem:[%s1494_s16 + $0x2] ss:$0 sm:$0xff] }
  0x58   : > { %1075 = vmatpush3.msra.mxu1 %v482_v26  ;;  %1102 = vmatprep.subr.mxu0 %v624_v34 }
  0x59   : > { %1076 = vmatprep.subr.mxu1 %v481_v27  ;;  %1103 = vmatpush3.msra.mxu0 %v624_v34  ;;  %v1503_v34 = vand.u32 127, %v740_v31 }
  0x5a   : > { %1077 = vmatpush3.msra.mxu1 %v481_v27  ;;  %1104 = vmatprep.subr.mxu0 %v623_v35 }
  0x5b   : > { %1078 = vmatprep.subr.mxu1 %v480_v28  ;;  %1105 = vmatpush3.msra.mxu0 %v623_v35  ;;  %vm742_vm2 = vcmp.eq.s32.totalorder %v1503_v34, 68  ;;  %vm768_vm3 = vcmp.lt.s32.totalorder %v1503_v34, 68 }
  0x5c   : > { %1079 = vmatpush3.msra.mxu1 %v480_v28  ;;  %1106 = vmatprep.subr.mxu0 %v622_v36 }
  0x5d   : > { %1107 = vmatpush3.msra.mxu0 %v622_v36 }
  0x5e   : > { %1108 = vmatprep.subr.mxu0 %v621_v37 }
  0x5f   : > { %1109 = vmatpush3.msra.mxu0 %v621_v37 }
  0x60   : > { %1110 = vmatprep.subr.mxu0 %v620_v38 }
  0x61   : > { %1111 = vmatpush3.msra.mxu0 %v620_v38 }
  0x62   : > { %1112 = vmatprep.subr.mxu0 %v619_v39 }
  0x63   : > { %1113 = vmatpush3.msra.mxu0 %v619_v39 }
  0x64   : > { %1114 = vmatprep.subr.mxu0 %v618_v40 }
  0x65   : > { %1115 = vmatpush3.msra.mxu0 %v618_v40 }
  0x66   : > { %1116 = vmatprep.subr.mxu0 %v617_v2 }
  0x67   : > { %1117 = vmatpush3.msra.mxu0 %v617_v2 }
  0x68   : > { %1118 = vmatprep.subr.mxu0 %v616_v3 }
  0x69   : > { %1119 = vmatpush3.msra.mxu0 %v616_v3 }
  0x6a   : > { %1120 = vmatprep.subr.mxu0 %v615_v4 }
  0x6b   : > { %1121 = vmatpush3.msra.mxu0 %v615_v4 }
  0x6c   : > { %1122 = vmatprep.subr.mxu0 %v614_v5 }
  0x6d   : > { %1123 = vmatpush3.msra.mxu0 %v614_v5 }
 0x107   : > { %v1038_v42 = vpop.f32.mrf.mxu0 }
 0x108   : > { %v439_v43 = vadd.f32 %v1038_v42, %v944_v41 }
 0x109   : > { %v433_v44 = vpop.f32.mrf.mxu0 }
 0x10a   : > { %v434_v45 = vadd.f32 %v944_v41, %v433_v44  ;;  %v473_v48 = vmax.f32 %v439_v43, 0.0 }
 0x10b   : > { %v1041_v46 = vpop.f32.mrf.mxu0 }
 0x10c   : > { %v472_v47 = vmax.f32 %v434_v45, 0.0  ;;  %v449_v49 = vadd.f32 %v1041_v46, %v944_v41 }
 0x10d   : > { %v443_v50 = vpop.f32.mrf.mxu0 }
 0x10e   : > { %v444_v51 = vadd.f32 %v944_v41, %v443_v50  ;;  %1080 = vmatprep.mubr.f32.mxu1 %v472_v47  ;;  %v475_v54 = vmax.f32 %v449_v49, 0.0 }
 0x10f   : > { %v1044_v52 = vpop.f32.mrf.mxu0  ;;  %1081 = vmatmul.mubr.f32.vlgmr.msra.gmra.mxu1 %v473_v48 }
 0x110   : > { %v474_v53 = vmax.f32 %v444_v51, 0.0  ;;  %v459_v55 = vadd.f32 %v1044_v52, %v944_v41 }
 0x111   : > { %v453_v56 = vpop.f32.mrf.mxu0 }
 0x112   : > { %v454_v57 = vadd.f32 %v944_v41, %v453_v56  ;;  %1083 = vmatprep.mubr.f32.mxu1 %v474_v53  ;;  %v477_v60 = vmax.f32 %v459_v55, 0.0 }
 0x113   : > { %v1047_v58 = vpop.f32.mrf.mxu0  ;;  %1084 = vmatmul.mubr.f32.gmra.mxu1 %v475_v54 }
 0x114   : > { %v476_v59 = vmax.f32 %v454_v57, 0.0  ;;  %v469_v61 = vadd.f32 %v1047_v58, %v944_v41 }
 0x115   : > { %v463_v62 = vpop.f32.mrf.mxu0 }
 0x116   : > { %v464_v63 = vadd.f32 %v944_v41, %v463_v62  ;;  %1086 = vmatprep.mubr.f32.mxu1 %v476_v59  ;;  %v479_v1 = vmax.f32 %v469_v61, 0.0 }
 0x117   : > { %1087 = vmatmul.mubr.f32.gmra.mxu1 %v477_v60 }
 0x118   : > { %v478_v0 = vmax.f32 %v464_v63, 0.0 }
 0x11a   : > { %1089 = vmatprep.mubr.f32.mxu1 %v478_v0 }
 0x11b   : > { %1090 = vmatmul.mubr.f32.gmra.mxu1 %v479_v1 }
 0x1cf   : > { %v1082_v7 = vpop.f32.mrf.mxu1 }
 0x1d0   : > { %v573_v8 = vadd.f32 %v1082_v7, %v954_v6 }
 0x1d1   : > { %v567_v9 = vpop.f32.mrf.mxu1 }
 0x1d2   : > { %v568_v10 = vadd.f32 %v954_v6, %v567_v9  ;;  %v607_v13 = vmax.f32 %v573_v8, 0.0 }
 0x1d3   : > { %v1085_v11 = vpop.f32.mrf.mxu1 }
 0x1d4   : > { %v606_v12 = vmax.f32 %v568_v10, 0.0  ;;  %v583_v14 = vadd.f32 %v1085_v11, %v954_v6 }
 0x1d5   : > { %v577_v15 = vpop.f32.mrf.mxu1 }
 0x1d6   : > { %v578_v16 = vadd.f32 %v954_v6, %v577_v15  ;;  %1124 = vmatprep.mubr.f32.mxu0 %v606_v12  ;;  %v609_v19 = vmax.f32 %v583_v14, 0.0 }
 0x1d7   : > { %v1088_v17 = vpop.f32.mrf.mxu1  ;;  %1125 = vmatmul.mubr.f32.vlgmr.msra.gmra.mxu0 %v607_v13 }
 0x1d8   : > { %v608_v18 = vmax.f32 %v578_v16, 0.0  ;;  %v593_v20 = vadd.f32 %v1088_v17, %v954_v6 }
 0x1d9   : > { %v587_v21 = vpop.f32.mrf.mxu1 }
 0x1da   : > { %v588_v22 = vadd.f32 %v954_v6, %v587_v21  ;;  %1127 = vmatprep.mubr.f32.mxu0 %v608_v18  ;;  %v611_v25 = vmax.f32 %v593_v20, 0.0 }
 0x1db   : > { %v1091_v23 = vpop.f32.mrf.mxu1  ;;  %1128 = vmatmul.mubr.f32.gmra.mxu0 %v609_v19 }
 0x1dc   : > { %v610_v24 = vmax.f32 %v588_v22, 0.0  ;;  %v603_v26 = vadd.f32 %v1091_v23, %v954_v6 }
 0x1dd   : > { %v597_v27 = vpop.f32.mrf.mxu1 }
 0x1de   : > { %v598_v28 = vadd.f32 %v954_v6, %v597_v27  ;;  %1130 = vmatprep.mubr.f32.mxu0 %v610_v24  ;;  %v613_v30 = vmax.f32 %v603_v26, 0.0 }
 0x1df   : > { %1131 = vmatmul.mubr.f32.gmra.mxu0 %v611_v25 }
 0x1e0   : > { %v612_v29 = vmax.f32 %v598_v28, 0.0 }
 0x1e2   : > { %1133 = vmatprep.mubr.f32.mxu0 %v612_v29 }
 0x1e3   : > { %1134 = vmatmul.mubr.f32.gmra.mxu0 %v613_v30 }
 0x297   : > { %v1126_v32 = vpop.f32.mrf.mxu0 }
 0x298   : > { %v707_v36 = vadd.f32 %v1126_v32, %v955_v33 }
 0x299   : > { %v701_v35 = vpop.f32.mrf.mxu0 }
 0x29a   : > { %v702_v37 = vadd.f32 %v955_v33, %v701_v35  ;;  %v744_v41 = vsel %vm742_vm2, %v707_v36, 0.0 }
 0x29b   : > { %v1129_v38 = vpop.f32.mrf.mxu0 }
 0x29c   : > { %v743_v39 = vsel %vm742_vm2, %v702_v37, 0.0  ;;  %v717_v42 = vadd.f32 %v1129_v38, %v955_v33 }
 0x29d   : > { %v711_v40 = vpop.f32.mrf.mxu0  ;;  %v751_v44 = vadd.f32 %v744_v41, %v743_v39 }
 0x29e   : > { %v712_v43 = vadd.f32 %v955_v33, %v711_v40  ;;  %v746_v49 = vsel %vm742_vm2, %v717_v42, 0.0 }
 0x29f   : > { %v1132_v45 = vpop.f32.mrf.mxu0 }
 0x2a0   : > { %v745_v46 = vsel %vm742_vm2, %v712_v43, 0.0  ;;  %v727_v50 = vadd.f32 %v1132_v45, %v955_v33 }
 0x2a1   : > { %v752_v47 = vadd.f32 %v751_v44, %v745_v46  ;;  %v721_v48 = vpop.f32.mrf.mxu0 }
 0x2a2   : > { %v722_v51 = vadd.f32 %v955_v33, %v721_v48  ;;  %v748_v57 = vsel %vm742_vm2, %v727_v50, 0.0 }
 0x2a3   : > { %v753_v52 = vadd.f32 %v752_v47, %v746_v49  ;;  %v1135_v53 = vpop.f32.mrf.mxu0 }
 0x2a4   : > { %v747_v54 = vsel %vm742_vm2, %v722_v51, 0.0  ;;  %v737_v58 = vadd.f32 %v1135_v53, %v955_v33 }
 0x2a5   : > { %v754_v55 = vadd.f32 %v753_v52, %v747_v54  ;;  %v731_v56 = vpop.f32.mrf.mxu0 }
 0x2a6   : > { %v732_v59 = vadd.f32 %v955_v33, %v731_v56  ;;  %v750_v63 = vsel %vm742_vm2, %v737_v58, 0.0 }
 0x2a7   : > { %v755_v60 = vadd.f32 %v754_v55, %v748_v57 }
 0x2a8   : > { %v749_v61 = vsel %vm742_vm2, %v732_v59, 0.0 }
 0x2a9   : > { %v756_v62 = vadd.f32 %v755_v60, %v749_v61 }
 0x2ab   : > { %v757_v0 = vadd.f32 %v756_v62, %v750_v63 }
 0x2ad   : > { %758 = vadd.xlane.f32.xlu0 %v757_v0 }
 0x336   : > { %v759_v1 = vpop.xlane.xlu0 %758 }
 0x337   : > { %v760_v2 = vrot.slane %v759_v1, 4 }
 0x339   : > { %v761_v3 = vadd.f32 %v760_v2, %v759_v1 }
 0x33b   : > { %v762_v4 = vrot.slane %v761_v3, 2 }
 0x33d   : > { %v763_v5 = vadd.f32 %v762_v4, %v761_v3 }
 0x33f   : > { %v764_v6 = vrot.slane %v763_v5, 1 }
 0x341   : > { %v765_v7 = vadd.f32 %v764_v6, %v763_v5 }
 0x343   : > { %1137 = vpush %v765_v7 }
 0x374   : > { %s1138_s12 = spop %1137 }
 0x375   : > { %s767_s8 = smul.f32 0.00022977941, %s1138_s12 }
 0x377   : > { %v769_v8 = vstv %s767_s8 }
 0x378   : > { %v770_v9 = vsub.f32 %v702_v37, %v769_v8  ;;  %v771_v10 = vsub.f32 %v707_v36, %v769_v8  ;;  %v772_v11 = vsub.f32 %v712_v43, %v769_v8  ;;  %v773_v12 = vsub.f32 %v717_v42, %v769_v8 }
 0x379   : > { %v774_v13 = vsub.f32 %v722_v51, %v769_v8  ;;  %v775_v14 = vsub.f32 %v727_v50, %v769_v8  ;;  %v776_v15 = vsub.f32 %v732_v59, %v769_v8  ;;  %v777_v16 = vsub.f32 %v737_v58, %v769_v8 }
 0x37a   : > { %v778_v17 = vsel %vm768_vm3, %v770_v9, -1e+30  ;;  %v779_v18 = vsel %vm768_vm3, %v771_v10, -1e+30  ;;  %v780_v19 = vsel %vm768_vm3, %v772_v11, -1e+30 }
 0x37b   : > { %v781_v20 = vsel %vm768_vm3, %v773_v12, -1e+30  ;;  %v782_v21 = vsel %vm768_vm3, %v774_v13, -1e+30  ;;  %v783_v22 = vsel %vm768_vm3, %v775_v14, -1e+30  ;;  %786 = vst [vmem:[%s300_s9] sm:$0xff] %v778_v17 }
 0x37c   : > { %787 = vst [vmem:[%s300_s9 + $0x8] sm:$0xff] %v779_v18  ;;  %788 = vst [vmem:[%s300_s9 + $0x10] sm:$0xff] %v780_v19  ;;  %v784_v23 = vsel %vm768_vm3, %v776_v15, -1e+30  ;;  %v785_v24 = vsel %vm768_vm3, %v777_v16, -1e+30 }
 0x37d   : > { %789 = vst [vmem:[%s300_s9 + $0x18] sm:$0xff] %v781_v20  ;;  %790 = vst [vmem:[%s300_s9 + $0x20] sm:$0xff] %v782_v21 }
 0x37e   : > { %791 = vst [vmem:[%s300_s9 + $0x28] sm:$0xff] %v783_v22  ;;  %792 = vst [vmem:[%s300_s9 + $0x30] sm:$0xff] %v784_v23 }
 0x37f   : > { %793 = vst [vmem:[%s300_s9 + $0x38] sm:$0xff] %v785_v24 }
 0x380   : > { %1230 = shalt.err (!%p1227_p0)
}
 0x381   : > { %s1231_s15 = scalar_lea.hbm %s1540_s29, 1024  ;;  %s1235_s12 = scalar_lea.hbm %s1594_s5, 2048 }
 0x382   : > { %p1232_p2 = scmp.ne.s32.totalorder %s1540_s29, %s1231_s15  ;;  %p1236_p3 = scmp.lt.s32.totalorder %s1540_s29, %s1594_s5 }
 0x383   : > { %p1237_p6 = scmp.lt.s32.totalorder %s1235_s12, %s1231_s15 }
 0x384   : > { %p1233_p9 = pnand %p1232_p2, %p1603_p13 }
 0x385   : > { %p1238_p11 = por %p1237_p6, %p1236_p3 }
 0x386   : > { %p1234_p1 = pneg %p1233_p9 }
 0x388   : > { %p1239_p12 = pnand %p1238_p11, %p1234_p1 }
 0x38a   : > { %1242 = shalt.err (!%p1239_p12)
}
 0x38b   : > { %s1287_s9 = smov 128   ;;  %s1288_s22 = smov 8  }
 0x38c   : > { %1141 = dma.vmem_to_hbm [thread:$0]  (%p1603_p13), %s1542_s10, 1024, %s1540_s29, %s795_s13, %s1287_s9, %s1287_s9, %s1288_s22  }
 0x38d PF: > { %s823_s11 = sand.u32 1, %s1269_s18   ;;  %p1604_p4 = scmp.ne.s32.totalorder %s1600_s6, 0 }
 0x38e   : > { %p1605_p5 = scmp.ge.s32.totalorder %s1281_s21, 2  ;;  %s824_s17 = scalar_lea.sflag [#allocation4], %s823_s11 }
 0x390   : > { %p1148_p7 = pnand %p1605_p5, %p1604_p4 }
 0x392   : > { %p1149_p8 = pneg %p1148_p7 }
 0x394   : > { %1264 = dma.done.wait (%p1149_p8), %s824_s17, 1024  }
 0x395   : > { %1266 = vsyncadd (%p1149_p8), %s824_s17, 4294966272  ;;  %p18_p10 = scmp.ge.s32.totalorder %s1344_s24, 4   ;;  %s1606_s18 = smov %s1273_s19 }
 0x396   : > { %s1607_s19 = smov %s1277_s20  ;;  %s1608_s20 = smov %s1356_s27 }
 0x397   : > { %s1609_s21 = smov %s1344_s24  ;;  %20 = sbr.rel (!%p18_p10) target bundleno = 5 (0x5), region = 97 }
 0x39c   :  { %829 = vsyncpa [#allocation3], 1 }
 0x39d   :  { %831 = vsyncpa [#allocation3 + $0x1], 1 }
 0x39e   :  { %832 = vsyncpa [#allocation4], 1 }
 0x39f   :  { %834 = vsyncpa [#allocation4 + $0x1], 1 }

</bundles_post_ra>
